<compile_context>
chip_gen: v7x
topology: tpu7x:2x2x1
jax: 0.10.0
libtpu: 0.0.40
codegen_flags: <defaults>
</compile_context>

<pallas_src>
import functools

import jax
import jax.numpy as jnp
from jax.experimental import pallas as pl
from jax.experimental.pallas import tpu as pltpu


def _sobelxy_kernel(x_ref, o_ref, *, img_h, img_w):
    """One block = several whole images, each flattened to one lane-major row."""
    x = x_ref[...]                                   # (B, L), L = img_h * img_w
    B, L = x.shape
    W = img_w
    zero = jnp.zeros((), x.dtype)

    lane = jax.lax.broadcasted_iota(jnp.int32, (B, L), 1)
    col = lane % W
    first_row = lane < W              # image row 0     -> up    neighbor is zero pad
    last_row = lane >= L - W          # image row H-1   -> down  neighbor is zero pad
    first_col = col == 0              # image col 0     -> left  neighbor is zero pad
    last_col = col == W - 1           # image col W-1   -> right neighbor is zero pad

    up = jnp.where(first_row, zero, pltpu.roll(x, W % L, axis=1))          # x[i-1, j]
    down = jnp.where(last_row, zero, pltpu.roll(x, (L - W) % L, axis=1))   # x[i+1, j]

    # Separable 3x3 Sobel: vertical pass, then horizontal pass.
    v = up + 2.0 * x + down           # [1, 2, 1]^T  * x   (vertical pass of kernelx)
    d = up - down                     # [1, 0, -1]^T * x   (vertical pass of kernely)

    def left(a):                      # a[i, j-1], zero at j == 0
        return jnp.where(first_col, zero, pltpu.roll(a, 1 % L, axis=1))

    def right(a):                     # a[i, j+1], zero at j == W-1
        return jnp.where(last_col, zero, pltpu.roll(a, (L - 1) % L, axis=1))

    gx = right(v) - left(v)                   # [1,2,1]^T (x) [-1,0,1]  == kernelx
    gy = left(d) + 2.0 * d + right(d)         # [1,0,-1]^T (x) [1,2,1]  == kernely

    o_ref[...] = (jnp.abs(gx) + jnp.abs(gy)).astype(o_ref.dtype)


def _pick_images_per_block(num_images, img_bytes, budget_bytes):
    """Largest divisor d of num_images such that d*img_bytes <= budget and d is a
    legal sublane block extent (multiple of 8, or the full extent).  Falls back to
    the smallest legal divisor when even that exceeds the budget."""
    legal = [d for d in range(1, num_images + 1)
             if num_images % d == 0 and (d == num_images or d % 8 == 0)]
    fitting = [d for d in legal if d * img_bytes <= budget_bytes]
    return max(fitting) if fitting else min(legal)


def sobelxy(x, *, block_budget_bytes=1 << 20):
    """Pallas TPU Sobelxy.forward: |conv2d(x, Kx, pad=1)| + |conv2d(x, Ky, pad=1)|.

    x: (N, C, H, W) with C == 1 (the module's conv weight is (1, 1, 3, 3))."""
    N, C, H, W = x.shape
    assert C == 1, "Sobelxy's conv weight is (1,1,3,3); input must have C == 1"
    nb = N * C
    itemsize = jnp.dtype(x.dtype).itemsize
    img_bytes = H * W * itemsize
    b_blk = _pick_images_per_block(nb, img_bytes, block_budget_bytes)
    grid = (nb // b_blk,)

    # Flatten every image to one lane-major row: (N*C, H*W).  Row-major reshape, free.
    xf = x.reshape(nb, H * W)

    kernel = functools.partial(_sobelxy_kernel, img_h=H, img_w=W)
    out = pl.pallas_call(
        kernel,
        out_shape=jax.ShapeDtypeStruct((nb, H * W), x.dtype),
        grid_spec=pl.GridSpec(
            grid=grid,
            in_specs=[pl.BlockSpec((b_blk, H * W), lambda i: (i, 0))],
            out_specs=pl.BlockSpec((b_blk, H * W), lambda i: (i, 0)),
        ),
        compiler_params=pltpu.CompilerParams(
            dimension_semantics=("parallel",)),
        cost_estimate=pl.CostEstimate(
            flops=13 * nb * H * W,
            transcendentals=0,
            bytes_accessed=2 * nb * H * W * itemsize),
    )(xf)
    return out.reshape(N, C, H, W)


def _sobelxy_ref(x):
    """Pure-JAX reference (conv_general_dilated), for the correctness check."""
    kx = jnp.array([[-1., 0., 1.], [-2., 0., 2.], [-1., 0., 1.]], jnp.float32)
    ky = jnp.array([[1., 2., 1.], [0., 0., 0.], [-1., -2., -1.]], jnp.float32)
    wx = kx[None, None]  # (1,1,3,3) OIHW
    wy = ky[None, None]
    dn = ("NCHW", "OIHW", "NCHW")
    gx = jax.lax.conv_general_dilated(x, wx, (1, 1), [(1, 1), (1, 1)],
                                      dimension_numbers=dn)
    gy = jax.lax.conv_general_dilated(x, wy, (1, 1), [(1, 1), (1, 1)],
                                      dimension_numbers=dn)
    return jnp.abs(gx) + jnp.abs(gy)


if __name__ == "__main__":
    key = jax.random.PRNGKey(0)
    # C must be 1 (the module's conv weight has in_channels = 1).
    x = jax.random.normal(key, (2, 1, 16, 16), dtype=jnp.float32)

    out = sobelxy(x)
    out = jax.block_until_ready(out)

    ref = _sobelxy_ref(x)
    assert out.shape == ref.shape
    assert jnp.allclose(out, ref, atol=1e-5, rtol=1e-5)
    print("KERNEL_OK")
</pallas_src>

<mosaic_0001>
module attributes {stable_mosaic.version = 11 : i64} {
  func.func @_sobelxy_kernel(%arg0: i32, %arg1: memref<2x256xf32, #tpu.memory_space<vmem>>, %arg2: memref<2x256xf32, #tpu.memory_space<vmem>>) attributes {dimension_semantics = [#tpu.dimension_semantics<parallel>], iteration_bounds = array<i64: 1>, scalar_prefetch = 0 : i64, scratch_operands = 0 : i64, tpu.core_type = #tpu.core_type<tc>, window_params = [{transform_indices = @transform_0, window_bounds = array<i64: 2, 256>}, {transform_indices = @transform_1, window_bounds = array<i64: 2, 256>}]} {
    %c0 = arith.constant 0 : index
    %c0_0 = arith.constant 0 : index
    %0 = vector.load %arg1[%c0, %c0_0] : memref<2x256xf32, #tpu.memory_space<vmem>>, vector<2x256xf32>
    %1 = tpu.iota {dimensions = array<i32: 1>} : vector<2x256xi32>
    %c16_i32 = arith.constant 16 : i32
    %c0_i32 = arith.constant 0 : i32
    %2 = arith.cmpi eq, %c16_i32, %c0_i32 : i32
    %c1_i32 = arith.constant 1 : i32
    %3 = arith.select %2, %c1_i32, %c16_i32 : i32
    %4 = vector.broadcast %3 : i32 to vector<2x256xi32>
    %5 = arith.remsi %1, %4 : vector<2x256xi32>
    %c0_i32_1 = arith.constant 0 : i32
    %6 = vector.broadcast %c0_i32_1 : i32 to vector<2x256xi32>
    %7 = arith.cmpi ne, %5, %6 : vector<2x256xi32>
    %c0_i32_2 = arith.constant 0 : i32
    %8 = vector.broadcast %c0_i32_2 : i32 to vector<2x256xi32>
    %9 = arith.cmpi slt, %5, %8 : vector<2x256xi32>
    %c0_i32_3 = arith.constant 0 : i32
    %10 = arith.cmpi slt, %3, %c0_i32_3 : i32
    %11 = vector.broadcast %10 : i1 to vector<2x256xi1>
    %12 = vector.broadcast %11 : vector<2x256xi1> to vector<2x256xi1>
    %13 = arith.xori %9, %12 : vector<2x256xi1>
    %14 = arith.andi %13, %7 : vector<2x256xi1>
    %15 = vector.broadcast %3 : i32 to vector<2x256xi32>
    %16 = arith.addi %5, %15 : vector<2x256xi32>
    %17 = arith.select %14, %16, %5 : vector<2x256xi1>, vector<2x256xi32>
    %c16_i32_4 = arith.constant 16 : i32
    %18 = vector.broadcast %c16_i32_4 : i32 to vector<2x256xi32>
    %19 = arith.cmpi slt, %1, %18 : vector<2x256xi32>
    %c240_i32 = arith.constant 240 : i32
    %20 = vector.broadcast %c240_i32 : i32 to vector<2x256xi32>
    %21 = arith.cmpi sge, %1, %20 : vector<2x256xi32>
    %c0_i32_5 = arith.constant 0 : i32
    %22 = vector.broadcast %c0_i32_5 : i32 to vector<2x256xi32>
    %23 = arith.cmpi eq, %17, %22 : vector<2x256xi32>
    %c15_i32 = arith.constant 15 : i32
    %24 = vector.broadcast %c15_i32 : i32 to vector<2x256xi32>
    %25 = arith.cmpi eq, %17, %24 : vector<2x256xi32>
    %c16_i32_6 = arith.constant 16 : i32
    %26 = tpu.dynamic_rotate %0 by %c16_i32_6 dim 1 : vector<2x256xf32>, i32 -> vector<2x256xf32>
    %cst = arith.constant 0.000000e+00 : f32
    %27 = vector.broadcast %cst : f32 to vector<2x256xf32>
    %28 = arith.select %19, %27, %26 : vector<2x256xi1>, vector<2x256xf32>
    %c240_i32_7 = arith.constant 240 : i32
    %29 = tpu.dynamic_rotate %0 by %c240_i32_7 dim 1 : vector<2x256xf32>, i32 -> vector<2x256xf32>
    %cst_8 = arith.constant 0.000000e+00 : f32
    %30 = vector.broadcast %cst_8 : f32 to vector<2x256xf32>
    %31 = arith.select %21, %30, %29 : vector<2x256xi1>, vector<2x256xf32>
    %cst_9 = arith.constant 2.000000e+00 : f32
    %32 = vector.broadcast %cst_9 : f32 to vector<2x256xf32>
    %33 = arith.mulf %32, %0 : vector<2x256xf32>
    %34 = arith.addf %28, %33 : vector<2x256xf32>
    %35 = arith.addf %34, %31 : vector<2x256xf32>
    %36 = arith.subf %28, %31 : vector<2x256xf32>
    %c255_i32 = arith.constant 255 : i32
    %37 = tpu.dynamic_rotate %35 by %c255_i32 dim 1 : vector<2x256xf32>, i32 -> vector<2x256xf32>
    %cst_10 = arith.constant 0.000000e+00 : f32
    %38 = vector.broadcast %cst_10 : f32 to vector<2x256xf32>
    %39 = arith.select %25, %38, %37 : vector<2x256xi1>, vector<2x256xf32>
    %c1_i32_11 = arith.constant 1 : i32
    %40 = tpu.dynamic_rotate %35 by %c1_i32_11 dim 1 : vector<2x256xf32>, i32 -> vector<2x256xf32>
    %cst_12 = arith.constant 0.000000e+00 : f32
    %41 = vector.broadcast %cst_12 : f32 to vector<2x256xf32>
    %42 = arith.select %23, %41, %40 : vector<2x256xi1>, vector<2x256xf32>
    %43 = arith.subf %39, %42 : vector<2x256xf32>
    %c1_i32_13 = arith.constant 1 : i32
    %44 = tpu.dynamic_rotate %36 by %c1_i32_13 dim 1 : vector<2x256xf32>, i32 -> vector<2x256xf32>
    %cst_14 = arith.constant 0.000000e+00 : f32
    %45 = vector.broadcast %cst_14 : f32 to vector<2x256xf32>
    %46 = arith.select %23, %45, %44 : vector<2x256xi1>, vector<2x256xf32>
    %cst_15 = arith.constant 2.000000e+00 : f32
    %47 = vector.broadcast %cst_15 : f32 to vector<2x256xf32>
    %48 = arith.mulf %47, %36 : vector<2x256xf32>
    %49 = arith.addf %46, %48 : vector<2x256xf32>
    %c255_i32_16 = arith.constant 255 : i32
    %50 = tpu.dynamic_rotate %36 by %c255_i32_16 dim 1 : vector<2x256xf32>, i32 -> vector<2x256xf32>
    %cst_17 = arith.constant 0.000000e+00 : f32
    %51 = vector.broadcast %cst_17 : f32 to vector<2x256xf32>
    %52 = arith.select %25, %51, %50 : vector<2x256xi1>, vector<2x256xf32>
    %53 = arith.addf %49, %52 : vector<2x256xf32>
    %54 = math.absf %43 : vector<2x256xf32>
    %55 = math.absf %53 : vector<2x256xf32>
    %56 = arith.addf %54, %55 : vector<2x256xf32>
    %c0_18 = arith.constant 0 : index
    %c0_19 = arith.constant 0 : index
    %57 = vector.load %arg2[%c0_18, %c0_19] : memref<2x256xf32, #tpu.memory_space<vmem>>, vector<2x256xf32>
    tpu.vector_store %arg2[%c0_18, %c0_19], %56 {strides = array<i32>} : memref<2x256xf32, #tpu.memory_space<vmem>>, vector<2x256xf32>,
    return
  }
  func.func @transform_0(%arg0: i32) -> (i32, i32) {
    %c0_i32 = arith.constant 0 : i32
    %c0_i32_0 = arith.constant 0 : i32
    return %arg0, %c0_i32 : i32, i32
  }
  func.func @transform_1(%arg0: i32) -> (i32, i32) {
    %c0_i32 = arith.constant 0 : i32
    %c0_i32_0 = arith.constant 0 : i32
    return %arg0, %c0_i32 : i32, i32
  }
}

</mosaic_0001>

<bundles_post_ra>
// kernel: tpu_custom_call.1
= control target key start
LH: loop header
LB: loop body
LE: loop exit
PB: predicated region body
PF: predicated region fallthrough
CT: control target
= control target key end

     0   :  { %6 = vsyncpa [#allocation3], 0  ;;  %s331_s0 = inlined_call_operand.hbm [shape: f32[2,256], index: 0, kind: input, shape index: {}]   ;;  %s332_s1 = inlined_call_operand.hbm [shape: f32[2,256], index: 1, kind: output, shape index: {}]  }
   0x1   :  { %7 = vsyncpa [#allocation4], 0  ;;  %s234_s6 = smov [#allocation2]   ;;  %s186_s10 = scalar_lea.hbm %s331_s0, 64 }
   0x2   :  { %s14_s7 = sshll.u32 %s234_s6, 4  ;;  %p187_p0 = scmp.ne.s32.totalorder %s331_s0, %s186_s10  ;;  %s15_s7 = int_to_ptr.vmem [resolvable:$true] %s14_s7 }
   0x3   :  { %p190_p1 = scmp.lt.u32.totalorder %s186_s10, %s331_s0 }
   0x5   :  { %p192_p2 = pnand %p190_p1, %p187_p0 }
   0x7   :  { %195 = shalt.err (!%p192_p2)
}
   0x8   :  { %s196_s15 = scalar_lea.vmem %s15_s7, 64  ;;  %p201_p4 = scmp.lt.s32.totalorder %s15_s7, %s15_s7 }
   0x9   :  { %p197_p3 = scmp.ne.s32.totalorder %s15_s7, %s196_s15  ;;  %p202_p5 = scmp.lt.s32.totalorder %s196_s15, %s196_s15 }
   0xb   :  { %p203_p6 = por %p202_p5, %p201_p4 }
   0xd   :  { %p204_p7 = pnand %p203_p6, %p197_p3 }
   0xf   :  { %207 = shalt.err (!%p204_p7)
}
  0x10   :  { %17 = dma.hbm_to_vmem [thread:$0]  %s331_s0, 64, %s15_s7, [#allocation3]  }
  0x11   :  { %230 = dma.done.wait [#allocation3], 64  }
  0x12   :  { %231 = vsyncadd [#allocation3], 4294967232  ;;  %v22_v0 = vlaneseq  ;;  %v235_v1 = vmov 1983009808   ;;  %v21_v6 = vld [vmem:[#allocation2] sm:$0xf] }
  0x13   :  { %v59_v2 = vunpack.c.l.s4 %v235_v1  ;;  %v85_v8 = vmul.f32 2.0, %v21_v6  ;;  %s236_s18 = smov 112   ;;  %s237_s19 = smov 16  }
  0x14   :  { %v62_v3 = vshrl.u32 %v22_v0, 7  ;;  %v263_v11 = vand.u32 127, %v22_v0  ;;  %s238_s0 = smov 1   ;;  %s239_s20 = smov 127  }
  0x15   :  { %v60_v4 = vunpack.c.0.s8 %v59_v2  ;;  %s240_s21 = smov [#allocation5]  }
  0x16   :  { %v24_v12 = vadd.s32 128, %v263_v11  ;;  %vm80_vm0 = vcmp.lt.s32.totalorder %v263_v11, 112  ;;  %vm49_vm1 = vcmp.lt.s32.totalorder %v263_v11, 16  ;;  %v29_v32 = vand.u32 15, %v263_v11  ;;  %s169_s22 = sshll.u32 %s240_s21, 4  ;;  %s170_s22 = int_to_ptr.vmem [resolvable:$true] %s169_s22 }
  0x17   :  { %v63_v5 = vsub.s32 %v60_v4, %v62_v3  ;;  %vm116_vm3 = vcmp.lt.s32.totalorder %v263_v11, 1  ;;  %vm107_vm4 = vcmp.lt.s32.totalorder %v263_v11, 127  ;;  %s208_s23 = scalar_lea.vmem %s170_s22, 64  ;;  %p213_p9 = scmp.lt.s32.totalorder %s170_s22, %s170_s22 }
  0x18   :  { %vm52_vm2 = vcmp.ge.s32.totalorder %v24_v12, 240  ;;  %v36_v33 = vand.u32 15, %v24_v12  ;;  %vm271_vm5 = vcmp.eq.s32.totalorder %v29_v32, 0  ;;  %vm283_vm7 = vcmp.eq.s32.totalorder %v29_v32, 15  ;;  %p209_p8 = scmp.ne.s32.totalorder %s170_s22, %s208_s23  ;;  %p214_p10 = scmp.lt.s32.totalorder %s208_s23, %s208_s23 }
  0x19   :  { %v64_v7 = vrot.slane %v21_v6, %v63_v5  ;;  %v93_v10 = vrot.slane %v85_v8, %v63_v5 }
  0x1a   :  { %vm277_vm6 = vcmp.eq.s32.totalorder %v36_v33, 0  ;;  %vm287_vm8 = vcmp.eq.s32.totalorder %v36_v33, 15  ;;  %p215_p11 = por %p214_p10, %p213_p9 }
  0x1b   :  { %76 = vrot.lane.b32.xlu1 %v64_v7, %s236_s18  ;;  %68 = vrot.lane.b32.xlu0 %v64_v7, %s237_s19  ;;  %v65_v9 = vcombine.high %v64_v7, %v64_v7  ;;  %v94_v15 = vcombine.high %v93_v10, %v93_v10 }
  0x1c   :  { %p216_p12 = pnand %p215_p11, %p209_p8 }
  0x1f   :  { %78 = vrot.lane.b32.xlu1 %v65_v9, %s236_s18  ;;  %70 = vrot.lane.b32.xlu0 %v65_v9, %s237_s19 }
  0x8d   :  { %v77_v13 = vpop.permute.xlu1 %76  ;;  %v69_v14 = vpop.permute.xlu0 %68 }
  0x91   :  { %v79_v16 = vpop.permute.xlu1 %78  ;;  %v71_v17 = vpop.permute.xlu0 %70 }
  0x92   :  { %v81_v18 = vsel %vm80_vm0, %v77_v13, %v79_v16  ;;  %v82_v19 = vsel %vm80_vm0, %v79_v16, %v77_v13  ;;  %v72_v20 = vsel %vm49_vm1, %v69_v14, %v71_v17  ;;  %v73_v21 = vsel %vm49_vm1, %v71_v17, %v69_v14 }
  0x93   :  { %v84_v22 = vsel %vm52_vm2, 0.0, %v82_v19  ;;  %v74_v23 = vsel %vm49_vm1, 0.0, %v73_v21  ;;  %v98_v25 = vadd.f32 %v94_v15, %v72_v20 }
  0x94   :  { %v97_v24 = vadd.f32 %v93_v10, %v74_v23  ;;  %v101_v26 = vsub.f32 %v74_v23, %v81_v18  ;;  %v102_v27 = vsub.f32 %v72_v20, %v84_v22 }
  0x95   :  { %v100_v29 = vadd.f32 %v98_v25, %v84_v22 }
  0x96   :  { %123 = vrot.lane.b32.xlu0 %v101_v26, %s238_s0  ;;  %125 = vrot.lane.b32.xlu1 %v102_v27, %s238_s0  ;;  %v99_v28 = vadd.f32 %v97_v24, %v81_v18  ;;  %v131_v49 = vmul.f32 2.0, %v101_v26  ;;  %v132_v53 = vmul.f32 2.0, %v102_v27 }
  0x9a   :  { %103 = vrot.lane.b32.xlu0 %v99_v28, %s239_s20  ;;  %105 = vrot.lane.b32.xlu1 %v100_v29, %s239_s20 }
  0x9e   :  { %112 = vrot.lane.b32.xlu0 %v99_v28, %s238_s0  ;;  %114 = vrot.lane.b32.xlu1 %v100_v29, %s238_s0 }
  0xa2   :  { %135 = vrot.lane.b32.xlu0 %v101_v26, %s239_s20  ;;  %137 = vrot.lane.b32.xlu1 %v102_v27, %s239_s20 }
 0x108   :  { %v124_v30 = vpop.permute.xlu0 %123  ;;  %v126_v31 = vpop.permute.xlu1 %125 }
 0x109   :  { %v128_v37 = vsel %vm116_vm3, %v126_v31, %v124_v30  ;;  %v127_v39 = vsel %vm116_vm3, %v124_v30, %v126_v31 }
 0x10a   :  { %v129_v45 = vsel %vm271_vm5, 0.0, %v128_v37  ;;  %v130_v50 = vsel %vm277_vm6, 0.0, %v127_v39 }
 0x10b   :  { %v133_v55 = vadd.f32 %v131_v49, %v129_v45  ;;  %v134_v60 = vadd.f32 %v132_v53, %v130_v50 }
 0x10c   :  { %v104_v34 = vpop.permute.xlu0 %103  ;;  %v106_v35 = vpop.permute.xlu1 %105 }
 0x10d   :  { %v108_v42 = vsel %vm107_vm4, %v104_v34, %v106_v35  ;;  %v109_v46 = vsel %vm107_vm4, %v106_v35, %v104_v34 }
 0x10e   :  { %v110_v54 = vsel %vm283_vm7, 0.0, %v108_v42  ;;  %v111_v56 = vsel %vm287_vm8, 0.0, %v109_v46 }
 0x110   :  { %v113_v43 = vpop.permute.xlu0 %112  ;;  %v115_v44 = vpop.permute.xlu1 %114 }
 0x111   :  { %v117_v47 = vsel %vm116_vm3, %v113_v43, %v115_v44  ;;  %v118_v48 = vsel %vm116_vm3, %v115_v44, %v113_v43 }
 0x112   :  { %v119_v51 = vsel %vm271_vm5, 0.0, %v118_v48  ;;  %v120_v52 = vsel %vm277_vm6, 0.0, %v117_v47 }
 0x113   :  { %v121_v57 = vsub.f32 %v110_v54, %v119_v51  ;;  %v122_v61 = vsub.f32 %v111_v56, %v120_v52 }
 0x114   :  { %v136_v58 = vpop.permute.xlu0 %135  ;;  %v138_v59 = vpop.permute.xlu1 %137 }
 0x115   :  { %v139_v62 = vsel %vm107_vm4, %v136_v58, %v138_v59  ;;  %v140_v63 = vsel %vm107_vm4, %v138_v59, %v136_v58  ;;  %v145_v4 = vand.u32 2147483647, %v121_v57  ;;  %v146_v5 = vand.u32 2147483647, %v122_v61 }
 0x116   :  { %v141_v0 = vsel %vm283_vm7, 0.0, %v139_v62  ;;  %v142_v1 = vsel %vm287_vm8, 0.0, %v140_v63 }
 0x117   :  { %v143_v2 = vadd.f32 %v141_v0, %v133_v55  ;;  %v144_v3 = vadd.f32 %v142_v1, %v134_v60 }
 0x119   :  { %v147_v6 = vand.u32 2147483647, %v143_v2  ;;  %v148_v7 = vand.u32 2147483647, %v144_v3 }
 0x11b   :  { %v149_v8 = vadd.f32 %v147_v6, %v145_v4  ;;  %v150_v9 = vadd.f32 %v148_v7, %v146_v5 }
 0x11d   :  { %v153_v10 = vcombine.low %v149_v8, %v150_v9 }
 0x11f   :  { %178 = vst.sshfl [vmem:[#allocation5] sm:$0x33 pattern:$0x76325410] %v153_v10 }
 0x120   :  { %219 = shalt.err (!%p216_p12)
}
 0x121   :  { %s220_s26 = scalar_lea.hbm %s332_s1, 64 }
 0x122   :  { %p221_p13 = scmp.ne.s32.totalorder %s332_s1, %s220_s26  ;;  %p224_p0 = scmp.lt.u32.totalorder %s220_s26, %s332_s1 }
 0x124   :  { %p226_p1 = pnand %p224_p0, %p221_p13 }
 0x126   :  { %229 = shalt.err (!%p226_p1)
}
 0x127   :  { %172 = dma.vmem_to_hbm [thread:$0]  %s170_s22, 64, %s332_s1, [#allocation4]  }
 0x128   :  { %232 = dma.done.wait [#allocation4], 64  }
 0x129   :  { %233 = vsyncadd [#allocation4], 4294967232 }
 0x12a   :  { %176 = vsyncpa [#allocation3], 1 }
 0x12b   :  { %177 = vsyncpa [#allocation4], 1 }

</bundles_post_ra>
